<compile_context>
chip_gen: v7x
topology: tpu7x:2x2x1
jax: 0.10.0
libtpu: 0.0.40
codegen_flags: <defaults>
</compile_context>

<pallas_src>
import jax
import jax.numpy as jnp
from jax.experimental import pallas as pl
from jax.experimental.pallas import tpu as pltpu


def _round_up(v, m):
    return ((v + m - 1) // m) * m


# ----------------------------------------------------------------------------
# Plain-JAX glue: sampling & grouping (data-dependent gathers / sort)
# ----------------------------------------------------------------------------
def square_distance(src, dst):
    # src: [B, N, C], dst: [B, M, C] -> [B, N, M]
    dist = -2.0 * jnp.matmul(src, jnp.swapaxes(dst, 1, 2))
    dist = dist + jnp.sum(src ** 2, -1)[..., None]
    dist = dist + jnp.sum(dst ** 2, -1)[:, None, :]
    return dist


def index_points(points, idx):
    # points: [B, N, C], idx: [B, ...] int -> [B, ..., C]
    B = points.shape[0]
    idx_flat = idx.reshape(B, -1)
    out = jnp.take_along_axis(points, idx_flat[..., None], axis=1)
    return out.reshape(idx.shape + (points.shape[-1],))


def farthest_point_sample(xyz, npoint):
    # xyz: [B, N, 3] -> [B, npoint] int32
    B, N, _ = xyz.shape
    # NOTE: torch seeds `farthest` with randint; we use index 0 deterministically.
    def body(i, state):
        centroids, distance, farthest = state
        centroids = centroids.at[:, i].set(farthest)
        centroid = jnp.take_along_axis(xyz, farthest[:, None, None], axis=1)  # [B,1,3]
        dist = jnp.sum((xyz - centroid) ** 2, -1)
        distance = jnp.minimum(distance, dist)
        farthest = jnp.argmax(distance, axis=-1).astype(jnp.int32)
        return centroids, distance, farthest

    centroids = jnp.zeros((B, npoint), jnp.int32)
    distance = jnp.full((B, N), 1e10, jnp.float32)
    farthest = jnp.zeros((B,), jnp.int32)
    centroids, _, _ = jax.lax.fori_loop(0, npoint, body, (centroids, distance, farthest))
    return centroids


def query_ball_point(radius, nsample, xyz, new_xyz):
    # xyz: [B, N, 3], new_xyz: [B, S, 3] -> [B, S, nsample] int32
    B, N, _ = xyz.shape
    S = new_xyz.shape[1]
    sqrdists = square_distance(new_xyz, xyz)                       # [B, S, N]
    group_idx = jnp.broadcast_to(jnp.arange(N, dtype=jnp.int32), (B, S, N))
    group_idx = jnp.where(sqrdists > radius ** 2, N, group_idx)
    group_idx = jnp.sort(group_idx, axis=-1)[:, :, :nsample]
    group_first = group_idx[:, :, :1]
    group_idx = jnp.where(group_idx == N, group_first, group_idx)
    return group_idx


def sample_and_group(npoint, radius, nsample, xyz, points):
    # xyz: [B, N, 3], points: [B, N, D] or None
    B, N, C = xyz.shape
    fps_idx = farthest_point_sample(xyz, npoint)                   # [B, S]
    new_xyz = index_points(xyz, fps_idx)                           # [B, S, 3]
    idx = query_ball_point(radius, nsample, xyz, new_xyz)          # [B, S, nsample]
    grouped_xyz = index_points(xyz, idx)                           # [B, S, nsample, 3]
    grouped_xyz_norm = grouped_xyz - new_xyz[:, :, None, :]
    if points is not None:
        grouped_points = index_points(points, idx)                 # [B, S, nsample, D]
        new_points = jnp.concatenate([grouped_xyz_norm, grouped_points], axis=-1)
    else:
        new_points = grouped_xyz_norm
    return new_xyz, new_points


def sample_and_group_all(xyz, points):
    B, N, C = xyz.shape
    new_xyz = jnp.zeros((B, 1, C), xyz.dtype)
    grouped_xyz = xyz[:, None, :, :]                               # [B, 1, N, 3]
    if points is not None:
        new_points = jnp.concatenate([grouped_xyz, points[:, None, :, :]], axis=-1)
    else:
        new_points = grouped_xyz
    return new_xyz, new_points


# ----------------------------------------------------------------------------
# Pallas kernel: chained (1x1 conv == matmul) + folded BN + ReLU, then max over nsample
# ----------------------------------------------------------------------------
def _make_mlp_max_kernel(num_layers, nsample, tile_s):
    def kernel(x_ref, *rest):
        out_ref = rest[-1]
        params = rest[:-1]                     # [w0, b0, w1, b1, ...]
        # x_ref is already a 2-D lane/sublane-dense (tile_s*nsample, C0p) bf16 slab;
        # the flatten happened in the wrapper so no in-kernel relayout is needed.
        h = x_ref[...]
        for l in range(num_layers):
            w = params[2 * l][...]             # bf16 (C_in, C_out_pad), BN scale folded in
            b = params[2 * l + 1][...]         # f32  (1, C_out_pad) folded BN shift (+conv bias)
            acc = jnp.dot(h, w, preferred_element_type=jnp.float32)   # MXU, f32 accum
            acc = jnp.maximum(acc + b, 0.0)    # folded BN + ReLU, f32 epilogue (VPU)
            h = acc.astype(jnp.bfloat16) if l < num_layers - 1 else acc
        c_last = h.shape[-1]
        # Max over the nsample neighborhood: sublane reduce -> XLU (free VLIW slot).
        # Padded output lanes stay exactly 0; padded rows are sliced off by the wrapper.
        out_ref[...] = jnp.max(h.reshape(tile_s, nsample, c_last), axis=1)
    return kernel


def _choose_tile_s(M, nsample, c0p, c_max_pad, c_last_pad, budget_bytes=20 * 1024 * 1024):
    """Largest power-of-two M-tile (>=8) whose live VMEM fits a v7x-safe budget, then
    shrunk to bound M-pad waste (<25%) and to give >=2 grid steps (2-TC sharding)."""
    tile_s = 512
    while tile_s > 8:
        rows = tile_s * nsample
        live = (2 * rows * c0p * 2              # input block, bf16, double-buffered
                + rows * c_max_pad * (4 + 2)    # widest f32 activation + bf16 recast
                + 2 * tile_s * c_last_pad * 4)  # output block, f32, double-buffered
        if live <= budget_bytes:
            break
        tile_s //= 2
    while tile_s > 8 and (4 * (_round_up(M, tile_s) - M) > max(M, 1)
                          or _round_up(M, tile_s) // tile_s < 2):
        tile_s //= 2
    return tile_s


def pointnet_mlp_max(x, weights, shifts, c_last_real):
    """x: [M, nsample, C0] float (natural channel width) -> [M, c_last_real] float32."""
    M, ns, c0 = x.shape
    L = len(weights)
    c0p = int(weights[0].shape[0])           # C0 rounded to the 8-sublane granule (NOT 128)
    c_last_p = int(weights[-1].shape[1])
    c_max_p = max(int(w.shape[1]) for w in weights)

    tile_s = _choose_tile_s(M, ns, c0p, c_max_p, c_last_p)
    M_pad = _round_up(M, tile_s)
    rows = tile_s * ns

    # Flatten (M, ns, C) -> (M*ns, C) in the wrapper (free, contiguous), cast to bf16
    # BEFORE padding, and do ONE pad that covers both the tiny channel pad (e.g. 7->8)
    # and the M-row pad.  No 128-lane channel padding is ever materialized in HBM.
    x2 = x.astype(jnp.bfloat16).reshape(M * ns, c0)
    if (M_pad != M) or (c0p != c0):
        x2 = jnp.pad(x2, ((0, (M_pad - M) * ns), (0, c0p - c0)))

    flat_params = []
    for w, b in zip(weights, shifts):
        flat_params += [w, b]

    flops = 2 * M_pad * ns * sum(int(w.shape[0]) * int(w.shape[1]) for w in weights)
    bytes_accessed = (M_pad * ns * c0p * 2
                      + M_pad * c_last_p * 4
                      + sum(int(w.size) * 2 + int(b.size) * 4 for w, b in zip(weights, shifts)))

    def build(single_buffer_weights):
        in_specs = [pl.BlockSpec((rows, c0p), lambda i: (i, 0))]
        wkw = dict(pipeline_mode=pl.Buffered(1)) if single_buffer_weights else {}
        for w, b in zip(weights, shifts):
            # Constant index maps -> DMA'd once across the grid; single-buffering avoids
            # a useless second VMEM copy per weight (matters on v7x's smaller VMEM).
            in_specs.append(pl.BlockSpec(w.shape, lambda i: (0, 0), **wkw))
            in_specs.append(pl.BlockSpec(b.shape, lambda i: (0, 0), **wkw))
        return pl.pallas_call(
            _make_mlp_max_kernel(L, ns, tile_s),
            out_shape=jax.ShapeDtypeStruct((M_pad, c_last_p), jnp.float32),
            grid=(M_pad // tile_s,),
            in_specs=in_specs,
            out_specs=pl.BlockSpec((tile_s, c_last_p), lambda i: (i, 0)),  # lane-dense store
            compiler_params=pltpu.CompilerParams(
                # Independent M tiles -> parallel (shards across v7x's 2 TCs; harmless elsewhere).
                dimension_semantics=("parallel",),
                vmem_limit_bytes=28 * 1024 * 1024),
            cost_estimate=pl.CostEstimate(
                flops=flops, transcendentals=0, bytes_accessed=bytes_accessed),
        )

    try:
        out = build(True)(x2, *flat_params)
    except Exception:
        # Fallback for jax versions without per-BlockSpec pipeline_mode / Buffered(1).
        out = build(False)(x2, *flat_params)

    return out[:M, :c_last_real]


# ----------------------------------------------------------------------------
# Module
# ----------------------------------------------------------------------------
class PointNetSetAbstraction:
    def __init__(self, npoint, radius, nsample, in_channel, mlp, group_all, key):
        self.npoint = npoint
        self.radius = radius
        self.nsample = nsample
        self.group_all = group_all
        self.in_channel = in_channel
        self.c_last = mlp[-1]
        eps = 1e-5

        weights, shifts = [], []
        last_real = in_channel
        last_pad = _round_up(in_channel, 8)    # tiny sublane-granule pad only (7 -> 8)
        for out_c in mlp:
            # Lane padding for layer outputs: 128 (vreg lanes); 256-granule for wide
            # layers so v6e/v7x 256x256 MXUs run at full array fill.
            pad_unit = 256 if out_c >= 256 else 128
            out_pad = _round_up(out_c, pad_unit)
            key, k1, k2 = jax.random.split(key, 3)
            w = jax.random.normal(k1, (last_real, out_c), jnp.float32) * 0.1      # conv weight^T
            b_conv = jax.random.normal(k2, (out_c,), jnp.float32) * 0.01
            gamma = jnp.ones((out_c,), jnp.float32)
            beta = jnp.zeros((out_c,), jnp.float32)
            running_mean = jnp.zeros((out_c,), jnp.float32)
            running_var = jnp.ones((out_c,), jnp.float32)
            # BatchNorm2d (eval mode) folded: scale into weight columns, shift separate.
            scale = gamma / jnp.sqrt(running_var + eps)
            shift = beta + (b_conv - running_mean) * scale
            w_folded = w * scale[None, :]
            # Zero-padded rows/cols/shift stay 0, so padded lanes remain exactly 0
            # through ReLU / max / subsequent layers.
            w_pad = jnp.zeros((last_pad, out_pad), jnp.float32).at[:last_real, :out_c].set(w_folded)
            shift_pad = jnp.zeros((1, out_pad), jnp.float32).at[0, :out_c].set(shift)
            weights.append(w_pad.astype(jnp.bfloat16))   # bf16 MXU inputs
            shifts.append(shift_pad)                     # f32 epilogue
            last_real, last_pad = out_c, out_pad
        self.weights, self.shifts = weights, shifts
        # TODO(synk): training-mode BatchNorm (batch statistics) not implemented; eval-mode stats used.

    def __call__(self, xyz, points):
        """
        xyz:    [B, 3, N]
        points: [B, D, N] or None
        returns new_xyz [B, 3, S], new_points [B, C_last, S]
        """
        xyz_t = jnp.transpose(xyz, (0, 2, 1))
        points_t = None if points is None else jnp.transpose(points, (0, 2, 1))
        if self.group_all:
            new_xyz, new_points = sample_and_group_all(xyz_t, points_t)
        else:
            new_xyz, new_points = sample_and_group(
                self.npoint, self.radius, self.nsample, xyz_t, points_t)
        # new_points: [B, S, nsample, C_in] (channels-last, natural width)
        B, S, ns, C = new_points.shape
        x = new_points.reshape(B * S, ns, C).astype(jnp.float32)
        feat = pointnet_mlp_max(x, self.weights, self.shifts, self.c_last)   # [B*S, C_last]
        feat = jnp.transpose(feat.reshape(B, S, -1), (0, 2, 1))              # [B, C_last, S]
        new_xyz_out = jnp.transpose(new_xyz, (0, 2, 1))                      # [B, 3, S]
        return new_xyz_out, feat


# ----------------------------------------------------------------------------
# Main
# ----------------------------------------------------------------------------
if __name__ == "__main__":
    key = jax.random.PRNGKey(0)
    k_xyz, k_pts, k_params = jax.random.split(key, 3)

    B, N, D = 2, 32, 4
    npoint, radius, nsample = 16, 0.5, 8
    in_channel = 3 + D                      # grouped xyz (3) + point features (D)
    mlp = [16, 32]

    xyz = jax.random.uniform(k_xyz, (B, 3, N), jnp.float32)      # [B, 3, N]
    points = jax.random.normal(k_pts, (B, D, N), jnp.float32)    # [B, D, N]

    sa = PointNetSetAbstraction(npoint, radius, nsample, in_channel, mlp,
                                group_all=False, key=k_params)

    new_xyz, new_feat = sa(xyz, points)
    jax.block_until_ready(new_xyz)
    jax.block_until_ready(new_feat)

    assert new_xyz.shape == (B, 3, npoint)
    assert new_feat.shape == (B, mlp[-1], npoint)
    print("KERNEL_OK")
</pallas_src>

<mosaic_0001>
module attributes {stable_mosaic.version = 11 : i64} {
  func.func @kernel(%arg0: i32, %arg1: memref<128x8xbf16, #tpu.memory_space<vmem>>, %arg2: memref<8x128xbf16, #tpu.memory_space<vmem>>, %arg3: memref<1x128xf32, #tpu.memory_space<vmem>>, %arg4: memref<128x128xbf16, #tpu.memory_space<vmem>>, %arg5: memref<1x128xf32, #tpu.memory_space<vmem>>, %arg6: memref<16x128xf32, #tpu.memory_space<vmem>>) attributes {dimension_semantics = [#tpu.dimension_semantics<parallel>], iteration_bounds = array<i64: 2>, scalar_prefetch = 0 : i64, scratch_operands = 0 : i64, tpu.core_type = #tpu.core_type<tc>, window_params = [{transform_indices = @transform_0, window_bounds = array<i64: 128, 8>}, {pipeline_mode = #tpu.pipeline_mode<synchronous>, transform_indices = @transform_1, window_bounds = array<i64: 8, 128>}, {pipeline_mode = #tpu.pipeline_mode<synchronous>, transform_indices = @transform_2, window_bounds = array<i64: 1, 128>}, {pipeline_mode = #tpu.pipeline_mode<synchronous>, transform_indices = @transform_3, window_bounds = array<i64: 128, 128>}, {pipeline_mode = #tpu.pipeline_mode<synchronous>, transform_indices = @transform_4, window_bounds = array<i64: 1, 128>}, {transform_indices = @transform_5, window_bounds = array<i64: 16, 128>}]} {
    %c0 = arith.constant 0 : index
    %c0_0 = arith.constant 0 : index
    %0 = vector.load %arg1[%c0, %c0_0] : memref<128x8xbf16, #tpu.memory_space<vmem>>, vector<128x8xbf16>
    %c0_1 = arith.constant 0 : index
    %c0_2 = arith.constant 0 : index
    %1 = vector.load %arg2[%c0_1, %c0_2] : memref<8x128xbf16, #tpu.memory_space<vmem>>, vector<8x128xbf16>
    %c0_3 = arith.constant 0 : index
    %c0_4 = arith.constant 0 : index
    %2 = vector.load %arg3[%c0_3, %c0_4] : memref<1x128xf32, #tpu.memory_space<vmem>>, vector<1x128xf32>
    %cst = arith.constant dense<0.000000e+00> : vector<128x128xf32>
    %3 = tpu.matmul %0, %1, %cst {dimension_numbers = #tpu.dot_dimension_numbers<[1], [0], [0], [1], [0, 0, 1, 1], [], []>} : vector<128x8xbf16>, vector<8x128xbf16>, vector<128x128xf32> -> vector<128x128xf32>
    %4 = vector.broadcast %2 : vector<1x128xf32> to vector<128x128xf32>
    %5 = arith.addf %3, %4 : vector<128x128xf32>
    %cst_5 = arith.constant 0.000000e+00 : f32
    %6 = vector.broadcast %cst_5 : f32 to vector<128x128xf32>
    %7 = arith.maximumf %5, %6 : vector<128x128xf32>
    %8 = arith.truncf %7 : vector<128x128xf32> to vector<128x128xbf16>
    %c0_6 = arith.constant 0 : index
    %c0_7 = arith.constant 0 : index
    %9 = vector.load %arg4[%c0_6, %c0_7] : memref<128x128xbf16, #tpu.memory_space<vmem>>, vector<128x128xbf16>
    %c0_8 = arith.constant 0 : index
    %c0_9 = arith.constant 0 : index
    %10 = vector.load %arg5[%c0_8, %c0_9] : memref<1x128xf32, #tpu.memory_space<vmem>>, vector<1x128xf32>
    %cst_10 = arith.constant dense<0.000000e+00> : vector<128x128xf32>
    %11 = tpu.matmul %8, %9, %cst_10 {dimension_numbers = #tpu.dot_dimension_numbers<[1], [0], [0], [1], [0, 0, 1, 1], [], []>} : vector<128x128xbf16>, vector<128x128xbf16>, vector<128x128xf32> -> vector<128x128xf32>
    %12 = vector.broadcast %10 : vector<1x128xf32> to vector<128x128xf32>
    %13 = arith.addf %11, %12 : vector<128x128xf32>
    %cst_11 = arith.constant 0.000000e+00 : f32
    %14 = vector.broadcast %cst_11 : f32 to vector<128x128xf32>
    %15 = arith.maximumf %13, %14 : vector<128x128xf32>
    %16 = vector.shape_cast %15 : vector<128x128xf32> to vector<16x8x128xf32>
    %cst_12 = arith.constant dense<0xFF800000> : vector<16x128xf32>
    %17 = vector.multi_reduction <maximumf>, %16, %cst_12 [1] : vector<16x8x128xf32> to vector<16x128xf32>
    %c0_13 = arith.constant 0 : index
    %c0_14 = arith.constant 0 : index
    %18 = vector.load %arg6[%c0_13, %c0_14] : memref<16x128xf32, #tpu.memory_space<vmem>>, vector<16x128xf32>
    tpu.vector_store %arg6[%c0_13, %c0_14], %17 {strides = array<i32>} : memref<16x128xf32, #tpu.memory_space<vmem>>, vector<16x128xf32>,
    return
  }
  func.func @transform_0(%arg0: i32) -> (i32, i32) {
    %c0_i32 = arith.constant 0 : i32
    %c0_i32_0 = arith.constant 0 : i32
    return %arg0, %c0_i32 : i32, i32
  }
  func.func @transform_1(%arg0: i32) -> (i32, i32) {
    %c0_i32 = arith.constant 0 : i32
    %c0_i32_0 = arith.constant 0 : i32
    %c0_i32_1 = arith.constant 0 : i32
    return %c0_i32, %c0_i32_0 : i32, i32
  }
  func.func @transform_2(%arg0: i32) -> (i32, i32) {
    %c0_i32 = arith.constant 0 : i32
    %c0_i32_0 = arith.constant 0 : i32
    %c0_i32_1 = arith.constant 0 : i32
    return %c0_i32, %c0_i32_0 : i32, i32
  }
  func.func @transform_3(%arg0: i32) -> (i32, i32) {
    %c0_i32 = arith.constant 0 : i32
    %c0_i32_0 = arith.constant 0 : i32
    %c0_i32_1 = arith.constant 0 : i32
    return %c0_i32, %c0_i32_0 : i32, i32
  }
  func.func @transform_4(%arg0: i32) -> (i32, i32) {
    %c0_i32 = arith.constant 0 : i32
    %c0_i32_0 = arith.constant 0 : i32
    %c0_i32_1 = arith.constant 0 : i32
    return %c0_i32, %c0_i32_0 : i32, i32
  }
  func.func @transform_5(%arg0: i32) -> (i32, i32) {
    %c0_i32 = arith.constant 0 : i32
    %c0_i32_0 = arith.constant 0 : i32
    return %arg0, %c0_i32 : i32, i32
  }
}

module attributes {stable_mosaic.version = 11 : i64} {
  func.func @kernel(%arg0: i32, %arg1: memref<128x8xbf16, #tpu.memory_space<vmem>>, %arg2: memref<8x128xbf16, #tpu.memory_space<vmem>>, %arg3: memref<1x128xf32, #tpu.memory_space<vmem>>, %arg4: memref<128x128xbf16, #tpu.memory_space<vmem>>, %arg5: memref<1x128xf32, #tpu.memory_space<vmem>>, %arg6: memref<16x128xf32, #tpu.memory_space<vmem>>) attributes {dimension_semantics = [#tpu.dimension_semantics<parallel>], iteration_bounds = array<i64: 2>, scalar_prefetch = 0 : i64, scratch_operands = 0 : i64, tpu.core_type = #tpu.core_type<tc>, window_params = [{transform_indices = @transform_0, window_bounds = array<i64: 128, 8>}, {pipeline_mode = #tpu.pipeline_mode<synchronous>, transform_indices = @transform_1, window_bounds = array<i64: 8, 128>}, {pipeline_mode = #tpu.pipeline_mode<synchronous>, transform_indices = @transform_2, window_bounds = array<i64: 1, 128>}, {pipeline_mode = #tpu.pipeline_mode<synchronous>, transform_indices = @transform_3, window_bounds = array<i64: 128, 128>}, {pipeline_mode = #tpu.pipeline_mode<synchronous>, transform_indices = @transform_4, window_bounds = array<i64: 1, 128>}, {transform_indices = @transform_5, window_bounds = array<i64: 16, 128>}]} {
    %c0 = arith.constant 0 : index
    %c0_0 = arith.constant 0 : index
    %0 = vector.load %arg1[%c0, %c0_0] : memref<128x8xbf16, #tpu.memory_space<vmem>>, vector<128x8xbf16>
    %c0_1 = arith.constant 0 : index
    %c0_2 = arith.constant 0 : index
    %1 = vector.load %arg2[%c0_1, %c0_2] : memref<8x128xbf16, #tpu.memory_space<vmem>>, vector<8x128xbf16>
    %c0_3 = arith.constant 0 : index
    %c0_4 = arith.constant 0 : index
    %2 = vector.load %arg3[%c0_3, %c0_4] : memref<1x128xf32, #tpu.memory_space<vmem>>, vector<1x128xf32>
    %cst = arith.constant dense<0.000000e+00> : vector<128x128xf32>
    %3 = tpu.matmul %0, %1, %cst {dimension_numbers = #tpu.dot_dimension_numbers<[1], [0], [0], [1], [0, 0, 1, 1], [], []>} : vector<128x8xbf16>, vector<8x128xbf16>, vector<128x128xf32> -> vector<128x128xf32>
    %4 = vector.broadcast %2 : vector<1x128xf32> to vector<128x128xf32>
    %5 = arith.addf %3, %4 : vector<128x128xf32>
    %cst_5 = arith.constant 0.000000e+00 : f32
    %6 = vector.broadcast %cst_5 : f32 to vector<128x128xf32>
    %7 = arith.maximumf %5, %6 : vector<128x128xf32>
    %8 = arith.truncf %7 : vector<128x128xf32> to vector<128x128xbf16>
    %c0_6 = arith.constant 0 : index
    %c0_7 = arith.constant 0 : index
    %9 = vector.load %arg4[%c0_6, %c0_7] : memref<128x128xbf16, #tpu.memory_space<vmem>>, vector<128x128xbf16>
    %c0_8 = arith.constant 0 : index
    %c0_9 = arith.constant 0 : index
    %10 = vector.load %arg5[%c0_8, %c0_9] : memref<1x128xf32, #tpu.memory_space<vmem>>, vector<1x128xf32>
    %cst_10 = arith.constant dense<0.000000e+00> : vector<128x128xf32>
    %11 = tpu.matmul %8, %9, %cst_10 {dimension_numbers = #tpu.dot_dimension_numbers<[1], [0], [0], [1], [0, 0, 1, 1], [], []>} : vector<128x128xbf16>, vector<128x128xbf16>, vector<128x128xf32> -> vector<128x128xf32>
    %12 = vector.broadcast %10 : vector<1x128xf32> to vector<128x128xf32>
    %13 = arith.addf %11, %12 : vector<128x128xf32>
    %cst_11 = arith.constant 0.000000e+00 : f32
    %14 = vector.broadcast %cst_11 : f32 to vector<128x128xf32>
    %15 = arith.maximumf %13, %14 : vector<128x128xf32>
    %16 = vector.shape_cast %15 : vector<128x128xf32> to vector<16x8x128xf32>
    %cst_12 = arith.constant dense<0xFF800000> : vector<16x128xf32>
    %17 = vector.multi_reduction <maximumf>, %16, %cst_12 [1] : vector<16x8x128xf32> to vector<16x128xf32>
    %c0_13 = arith.constant 0 : index
    %c0_14 = arith.constant 0 : index
    %18 = vector.load %arg6[%c0_13, %c0_14] : memref<16x128xf32, #tpu.memory_space<vmem>>, vector<16x128xf32>
    tpu.vector_store %arg6[%c0_13, %c0_14], %17 {strides = array<i32>} : memref<16x128xf32, #tpu.memory_space<vmem>>, vector<16x128xf32>,
    return
  }
  func.func @transform_0(%arg0: i32) -> (i32, i32) {
    %c0_i32 = arith.constant 0 : i32
    %c0_i32_0 = arith.constant 0 : i32
    return %arg0, %c0_i32 : i32, i32
  }
  func.func @transform_1(%arg0: i32) -> (i32, i32) {
    %c0_i32 = arith.constant 0 : i32
    %c0_i32_0 = arith.constant 0 : i32
    %c0_i32_1 = arith.constant 0 : i32
    return %c0_i32, %c0_i32_0 : i32, i32
  }
  func.func @transform_2(%arg0: i32) -> (i32, i32) {
    %c0_i32 = arith.constant 0 : i32
    %c0_i32_0 = arith.constant 0 : i32
    %c0_i32_1 = arith.constant 0 : i32
    return %c0_i32, %c0_i32_0 : i32, i32
  }
  func.func @transform_3(%arg0: i32) -> (i32, i32) {
    %c0_i32 = arith.constant 0 : i32
    %c0_i32_0 = arith.constant 0 : i32
    %c0_i32_1 = arith.constant 0 : i32
    return %c0_i32, %c0_i32_0 : i32, i32
  }
  func.func @transform_4(%arg0: i32) -> (i32, i32) {
    %c0_i32 = arith.constant 0 : i32
    %c0_i32_0 = arith.constant 0 : i32
    %c0_i32_1 = arith.constant 0 : i32
    return %c0_i32, %c0_i32_0 : i32, i32
  }
  func.func @transform_5(%arg0: i32) -> (i32, i32) {
    %c0_i32 = arith.constant 0 : i32
    %c0_i32_0 = arith.constant 0 : i32
    return %arg0, %c0_i32 : i32, i32
  }
}

</mosaic_0001>

<bundles_post_ra>
// kernel: tpu_custom_call.1
= control target key start
LH: loop header
LB: loop body
LE: loop exit
PB: predicated region body
PF: predicated region fallthrough
CT: control target
= control target key end

     0   :  { %10 = vsyncpa [#allocation3], 0  ;;  %s1317_s0 = inlined_call_operand.vmem [shape: bf16[256,8], index: 0, kind: input, shape index: {}]   ;;  %s1318_s1 = inlined_call_operand.vmem [shape: bf16[8,128], index: 1, kind: input, shape index: {}]   ;;  %s1319_s2 = inlined_call_operand.vmem [shape: f32[1,128], index: 2, kind: input, shape index: {}]   ;;  %s1320_s3 = inlined_call_operand.vmem [shape: bf16[128,128], index: 3, kind: input, shape index: {}]   ;;  %s1321_s4 = inlined_call_operand.vmem [shape: f32[1,128], index: 4, kind: input, shape index: {}]   ;;  %s1322_s5 = inlined_call_operand.hbm [shape: f32[32,128], index: 5, kind: output, shape index: {}]  }
   0x1   :  { %12 = vsyncpa [#allocation3 + $0x1], 0  ;;  %s1123_s18 = smov 0   ;;  %s1125_s19 = smov 0  }
   0x2   :  { %s1127_s20 = smov 0   ;;  %s1129_s21 = smov 0  }
   0x3 LB: > { %s1144_s22 = sadd.s32 4294967295, %s1088_s21   ;;  %s838_s23 = sadd.s32 4294967294, %s1088_s21   ;;  %s1088_s21 = sphi %s1129_s21, %s1328_s21   ;;  %s1084_s20 = sphi %s1127_s20, %s1327_s20   ;;  %s1080_s19 = sphi %s1125_s19, %s1326_s19   ;;  %s1076_s18 = sphi %s1123_s18, %s1325_s18  }
   0x4   : > { %s1148_s24 = sadd.s32 1, %s1088_s21   ;;  %s135_s25 = sadd.s32 1, %s1084_s20 }
   0x5   : > { %s132_s26 = ssub.s32 %s1088_s21, %s1148_s24  ;;  %p145_p0 = scmp.ne.s32.totalorder %s1084_s20, %s1080_s19 }
   0x6   : > { %p133_p1 = scmp.eq.s32.totalorder %s132_s26, 0  ;;  %p146_p2 = scmp.eq.s32.totalorder %s1144_s22, 1 }
   0x7   : > { %p151_p3 = scmp.ne.s32.totalorder %s1080_s19, %s1076_s18  ;;  %p152_p4 = scmp.eq.s32.totalorder %s838_s23, 1 }
   0x8   : > { %s1159_s27 = scalar_select %p133_p1, %s1084_s20, %s135_s25  }
   0x9   : > { %p1161_p5 = por %p146_p2, %p145_p0  ;;  %p1165_p6 = por %p152_p4, %p151_p3 }
   0xa   : > { %p841_p7 = scmp.ge.s32.totalorder %s1088_s21, 1  ;;  %p191_p8 = scmp.lt.s32.totalorder %s1088_s21, 3 }
   0xc   : > { %p192_p9 = pnand %p841_p7, %p191_p8 }
   0xd   : > { %v243_v0 = vld [vmem:[%s1318_s1] sm:$0xf] (!%p192_p9)  ;;  %vm316_vm0 = vcmask (!%p192_p9), 1043456   ;;  %s843_s7 = sshll.u32 (!%p192_p9), %s1144_s22, 4  ;;  %v1019_v3 = vld [vmem:[%s1320_s3 + $0x8] sm:$0xff] (!%p192_p9)   ;;  %vm291_vm1 = vcmask (!%p192_p9), 64512  }
   0xe   : > { %195 = sbr.rel (%p192_p9) target bundleno = 523 (0x20b), region = 40  ;;  %v1018_v1 = vld [vmem:[%s1320_s3] sm:$0xff] (!%p192_p9)   ;;  %968 = vmatprep.subr.msk.bf16.mxu0 (!%p192_p9), %vm316_vm0, %v243_v0  ;;  %v318_v2 = vsel (!%p192_p9), %vm316_vm0, %v243_v0, 0  ;;  %p220_p10 = scmp.lt.s32.totalorder (!%p192_p9), %s843_s7, 31  ;;  %v1020_v4 = vld [vmem:[%s1320_s3 + $0x10] sm:$0xff] (!%p192_p9)   ;;  %v1021_v8 = vld [vmem:[%s1320_s3 + $0x18] sm:$0xff] (!%p192_p9)  }
   0xf   : > { %903 = vmatpush3.bf16.msra.mxu0 (!%p192_p9), %v318_v2  ;;  %952 = vmatprep.subr.bf16.mxu1 (!%p192_p9), %v1018_v1  ;;  %v1022_v10 = vld [vmem:[%s1320_s3 + $0x20] sm:$0xff] (!%p192_p9)   ;;  %v1023_v12 = vld [vmem:[%s1320_s3 + $0x28] sm:$0xff] (!%p192_p9)   ;;  %v1024_v16 = vld [vmem:[%s1320_s3 + $0x30] sm:$0xff] (!%p192_p9)   ;;  %vm737_vm2 = vcmask (!%p192_p9), 1041409   ;;  %vm739_vm3 = vcmask (!%p192_p9), 1042434   ;;  %vm741_vm4 = vcmask (!%p192_p9), 1043459  }
  0x10   : > { %920 = vmatprep.subr.bf16.mxu0 (!%p192_p9), %v1018_v1  ;;  %960 = vmatpush3.bf16.msra.mxu1 (!%p192_p9), %v1018_v1  ;;  %v1025_v17 = vld [vmem:[%s1320_s3 + $0x38] sm:$0xff] (!%p192_p9)   ;;  %v845_v18 = vld [vmem:[%s1319_s2] ss:$0 sm:$0xff] (!%p192_p9)  ;;  %vm743_vm5 = vcmask (!%p192_p9), 1044484   ;;  %vm745_vm6 = vcmask (!%p192_p9), 1045509   ;;  %vm747_vm7 = vcmask (!%p192_p9), 1046534  }
  0x11   : > { %953 = vmatprep.subr.bf16.mxu1 (!%p192_p9), %v1019_v3  ;;  %s216_s16 = sand.u32 (!%p192_p9), 1, %s1080_s19   ;;  %vm749_vm8 = vcmask (!%p192_p9), 1047559   ;;  %s876_s25 = sshll.u32 (!%p192_p9), %s1144_s22, 8 }
  0x12   : > { %s842_s17 = sshll.u32 (!%p192_p9), %s216_s16, 4  ;;  %s1276_s22 = scalar_lea.sflag (!%p192_p9), [#allocation3], %s216_s16 }
  0x13   : > { %s1254_s23 = scalar_lea.vmem (!%p192_p9), [#allocation2], %s842_s17  ;;  %s1090_s9 = smov (!%p192_p9), [#allocation2]  }
  0x14   : > { %961 = vmatpush3.bf16.msra.mxu1 (!%p192_p9), %v1019_v3  ;;  %s776_s26 = sshll.u32 (!%p192_p9), %s1254_s23, 4  ;;  %s1030_s10 = sshll.u32 (!%p192_p9), %s1090_s9, 4  ;;  %s1269_s26 = int_to_ptr.vmem [resolvable:$true] %s776_s26  ;;  %s1031_s10 = int_to_ptr.vmem [resolvable:$false] %s1030_s10 }
  0x15   : > { %s1330_s7 = smov (!%p220_p10, %s843_s7), 31  ;;  %954 = vmatprep.subr.bf16.mxu1 %v1020_v4  ;;  %s1026_s8 = scalar_lea.vmem %s1269_s26, 256 }
  0x16   : > { %s844_s12 = sshll.u32 %s1330_s7, 2  ;;  %s1267_s7 = scalar_lea.hbm %s1322_s5, %s876_s25 }
  0x17   : > { %s1184_s15 = scalar_lea.vmem %s1317_s0, %s844_s12  ;;  %p1027_p11 = scmp.ne.s32.totalorder %s1269_s26, %s1026_s8 }
  0x18   : > { %v1010_v5 = vld [vmem:[%s1184_s15] sm:$0xff]   ;;  %v1011_v6 = vld [vmem:[%s1184_s15 + $0x8] sm:$0xff]   ;;  %v1012_v7 = vld [vmem:[%s1184_s15 + $0x10] sm:$0xff]   ;;  %962 = vmatpush3.bf16.msra.mxu1 %v1020_v4  ;;  %s1032_s11 = scalar_lea.vmem %s1031_s10, 512  ;;  %p1033_p0 = scmp.lt.s32.totalorder %s1269_s26, %s1031_s10 }
  0x19   : > { %904 = vmatprep.mubr.msk.bf16.mxu0 %vm291_vm1, %v1010_v5  ;;  %v1013_v9 = vld [vmem:[%s1184_s15 + $0x18] sm:$0xff]   ;;  %955 = vmatprep.subr.bf16.mxu1 %v1021_v8  ;;  %v1014_v11 = vld [vmem:[%s1184_s15 + $0x20] sm:$0xff]   ;;  %v1015_v13 = vld [vmem:[%s1184_s15 + $0x28] sm:$0xff]   ;;  %p1028_p12 = pnand %p1027_p11, %p1161_p5  ;;  %p1034_p1 = scmp.lt.s32.totalorder %s1032_s11, %s1026_s8 }
  0x1a   : > { %905 = vmatmul.mubr.msk.bf16.vlgmr.msra.gmra.mrb[0].mxu0 %vm291_vm1, %v1011_v6  ;;  %v1016_v14 = vld [vmem:[%s1184_s15 + $0x30] sm:$0xff]   ;;  %v1017_v15 = vld [vmem:[%s1184_s15 + $0x38] sm:$0xff]  }
  0x1b   : > { %908 = vmatprep.mubr.msk.bf16.mxu0 %vm291_vm1, %v1012_v7  ;;  %921 = vmatpush3.bf16.msra.mxu0 %v1018_v1  ;;  %p1029_p13 = pneg %p1028_p12  ;;  %p1035_p2 = por %p1034_p1, %p1033_p0 }
  0x1c   : > { %922 = vmatprep.subr.bf16.mxu0 %v1019_v3  ;;  %963 = vmatpush3.bf16.msra.mxu1 %v1021_v8 }
  0x1d   : > { %956 = vmatprep.subr.bf16.mxu1 %v1022_v10  ;;  %p1036_p3 = pnand %p1035_p2, %p1029_p13 }
  0x1f   : > { %923 = vmatpush3.bf16.msra.mxu0 %v1019_v3 }
  0x20   : > { %924 = vmatprep.subr.bf16.mxu0 %v1020_v4  ;;  %964 = vmatpush3.bf16.msra.mxu1 %v1022_v10 }
  0x21   : > { %957 = vmatprep.subr.bf16.mxu1 %v1023_v12 }
  0x22   : > { %909 = vmatmul.mubr.msk.bf16.gmra.mrb[4].mxu0 %vm291_vm1, %v1013_v9 }
  0x23   : > { %912 = vmatprep.mubr.msk.bf16.mxu0 %vm291_vm1, %v1014_v11  ;;  %925 = vmatpush3.bf16.msra.mxu0 %v1020_v4  ;;  %v1226_v11 = vld [vmem:[%s1321_s4] ss:$0 sm:$0xff] }
  0x24   : > { %926 = vmatprep.subr.bf16.mxu0 %v1021_v8  ;;  %965 = vmatpush3.bf16.msra.mxu1 %v1023_v12 }
  0x25   : > { %958 = vmatprep.subr.bf16.mxu1 %v1024_v16 }
  0x27   : > { %927 = vmatpush3.bf16.msra.mxu0 %v1021_v8 }
  0x28   : > { %928 = vmatprep.subr.bf16.mxu0 %v1022_v10  ;;  %966 = vmatpush3.bf16.msra.mxu1 %v1024_v16 }
  0x29   : > { %959 = vmatprep.subr.bf16.mxu1 %v1025_v17 }
  0x2a   : > { %913 = vmatmul.mubr.msk.bf16.gmra.mrb[8].mxu0 %vm291_vm1, %v1015_v13 }
  0x2b   : > { %916 = vmatprep.mubr.msk.bf16.mxu0 %vm291_vm1, %v1016_v14  ;;  %929 = vmatpush3.bf16.msra.mxu0 %v1022_v10 }
  0x2c   : > { %930 = vmatprep.subr.bf16.mxu0 %v1023_v12  ;;  %967 = vmatpush3.bf16.msra.mxu1 %v1025_v17 }
  0x2f   : > { %931 = vmatpush3.bf16.msra.mxu0 %v1023_v12 }
  0x30   : > { %932 = vmatprep.subr.bf16.mxu0 %v1024_v16 }
  0x32   : > { %917 = vmatmul.mubr.msk.bf16.gmra.mrb[12].mxu0 %vm291_vm1, %v1017_v15 }
  0x33   : > { %933 = vmatpush3.bf16.msra.mxu0 %v1024_v16 }
  0x34   : > { %934 = vmatprep.subr.bf16.mxu0 %v1025_v17 }
  0x37   : > { %935 = vmatpush3.bf16.msra.mxu0 %v1025_v17 }
  0xed   : > { %v906_v19 = vpop.f32.mrb[0].mxu0 }
  0xee   : > { %v363_v20 = vadd.f32 %v906_v19, %v845_v18  ;;  %v354_v21 = vpop.f32.mrb[1].mxu0 }
  0xef   : > { %v355_v22 = vadd.f32 %v845_v18, %v354_v21  ;;  %v907_v23 = vpop.f32.mrb[2].mxu0 }
  0xf0   : > { %v366_v24 = vadd.f32 %v907_v23, %v845_v18  ;;  %v357_v25 = vpop.f32.mrb[3].mxu0  ;;  %v419_v27 = vmax.f32 %v363_v20, 0.0 }
  0xf1   : > { %v358_v26 = vadd.f32 %v845_v18, %v357_v25  ;;  %v417_v29 = vmax.f32 %v355_v22, 0.0 }
  0xf2   : > { %v420_v28 = vmax.f32 %v366_v24, 0.0 }
  0xf3   : > { %v418_v30 = vmax.f32 %v358_v26, 0.0 }
  0xf4   : > { %v434_v31 = vpack.c.bf16 %v420_v28, %v419_v27 }
  0xf5   : > { %v433_v32 = vpack.c.bf16 %v418_v30, %v417_v29  ;;  %v910_v33 = vpop.f32.mrb[4].mxu0 }
  0xf6   : > { %v379_v34 = vadd.f32 %v910_v33, %v845_v18  ;;  %v370_v35 = vpop.f32.mrb[5].mxu0 }
  0xf7   : > { %v371_v36 = vadd.f32 %v845_v18, %v370_v35  ;;  %v911_v37 = vpop.f32.mrb[6].mxu0  ;;  %936 = vmatprep.mubr.bf16.mxu0 %v433_v32 }
  0xf8   : > { %v382_v38 = vadd.f32 %v911_v37, %v845_v18  ;;  %v373_v39 = vpop.f32.mrb[7].mxu0  ;;  %937 = vmatmul.mubr.bf16.vlgmr.msra.gmra.mrb[16].mxu0 %v434_v31  ;;  %v423_v41 = vmax.f32 %v379_v34, 0.0 }
  0xf9   : > { %v374_v40 = vadd.f32 %v845_v18, %v373_v39  ;;  %v421_v43 = vmax.f32 %v371_v36, 0.0 }
  0xfa   : > { %v424_v42 = vmax.f32 %v382_v38, 0.0 }
  0xfb   : > { %v422_v44 = vmax.f32 %v374_v40, 0.0 }
  0xfc   : > { %v436_v45 = vpack.c.bf16 %v424_v42, %v423_v41 }
  0xfd   : > { %v914_v46 = vpop.f32.mrb[8].mxu0  ;;  %v435_v47 = vpack.c.bf16 %v422_v44, %v421_v43 }
  0xfe   : > { %v395_v48 = vadd.f32 %v914_v46, %v845_v18  ;;  %v386_v49 = vpop.f32.mrb[9].mxu0 }
  0xff   : > { %v387_v50 = vadd.f32 %v845_v18, %v386_v49  ;;  %v915_v51 = vpop.f32.mrb[10].mxu0  ;;  %940 = vmatprep.mubr.bf16.mxu1 %v435_v47 }
 0x100   : > { %v398_v52 = vadd.f32 %v915_v51, %v845_v18  ;;  %v389_v53 = vpop.f32.mrb[11].mxu0  ;;  %941 = vmatmul.mubr.bf16.vlgmr.msra.gmra.mrb[0].mxu1 %v436_v45  ;;  %v427_v55 = vmax.f32 %v395_v48, 0.0 }
 0x101   : > { %v390_v54 = vadd.f32 %v845_v18, %v389_v53  ;;  %v425_v57 = vmax.f32 %v387_v50, 0.0 }
 0x102   : > { %v428_v56 = vmax.f32 %v398_v52, 0.0 }
 0x103   : > { %v426_v58 = vmax.f32 %v390_v54, 0.0 }
 0x104   : > { %v438_v59 = vpack.c.bf16 %v428_v56, %v427_v55 }
 0x105   : > { %v437_v60 = vpack.c.bf16 %v426_v58, %v425_v57  ;;  %v918_v61 = vpop.f32.mrb[12].mxu0 }
 0x106   : > { %v411_v62 = vadd.f32 %v918_v61, %v845_v18  ;;  %v402_v63 = vpop.f32.mrb[13].mxu0 }
 0x107   : > { %v403_v0 = vadd.f32 %v845_v18, %v402_v63  ;;  %v919_v1 = vpop.f32.mrb[14].mxu0  ;;  %944 = vmatprep.mubr.bf16.mxu1 %v437_v60 }
 0x108   : > { %v414_v2 = vadd.f32 %v919_v1, %v845_v18  ;;  %v405_v3 = vpop.f32.mrb[15].mxu0  ;;  %945 = vmatmul.mubr.bf16.gmra.mrb[4].mxu1 %v438_v59  ;;  %v431_v5 = vmax.f32 %v411_v62, 0.0 }
 0x109   : > { %v406_v4 = vadd.f32 %v845_v18, %v405_v3  ;;  %v429_v7 = vmax.f32 %v403_v0, 0.0 }
 0x10a   : > { %v432_v6 = vmax.f32 %v414_v2, 0.0 }
 0x10b   : > { %v430_v8 = vmax.f32 %v406_v4, 0.0 }
 0x10c   : > { %v440_v9 = vpack.c.bf16 %v432_v6, %v431_v5 }
 0x10d   : > { %v439_v10 = vpack.c.bf16 %v430_v8, %v429_v7 }
 0x10f   : > { %948 = vmatprep.mubr.bf16.mxu1 %v439_v10 }
 0x110   : > { %949 = vmatmul.mubr.bf16.gmra.mrb[8].mxu1 %v440_v9 }
 0x1cb   : > { %v938_v12 = vpop.f32.mrb[16].mxu0 }
 0x1cc   : > { %v555_v13 = vadd.f32 %v938_v12, %v1226_v11  ;;  %v546_v14 = vpop.f32.mrb[17].mxu0 }
 0x1cd   : > { %v547_v15 = vadd.f32 %v1226_v11, %v546_v14  ;;  %v939_v16 = vpop.f32.mrb[18].mxu0 }
 0x1ce   : > { %v611_v17 = vmax.f32 %v555_v13, 0.0  ;;  %v558_v18 = vadd.f32 %v939_v16, %v1226_v11  ;;  %v549_v19 = vpop.f32.mrb[19].mxu0 }
 0x1cf   : > { %v609_v20 = vmax.f32 %v547_v15, 0.0  ;;  %v550_v21 = vadd.f32 %v1226_v11, %v549_v19 }
 0x1d0   : > { %v637_v22 = vrot.slane %v611_v17, 4  ;;  %v612_v23 = vmax.f32 %v558_v18, 0.0 }
 0x1d1   : > { %v625_v24 = vrot.slane %v609_v20, 4  ;;  %v610_v25 = vmax.f32 %v550_v21, 0.0 }
 0x1d2   : > { %v638_v26 = vmax.f32 %v611_v17, %v637_v22  ;;  %v643_v27 = vrot.slane %v612_v23, 4 }
 0x1d3   : > { %v626_v28 = vmax.f32 %v609_v20, %v625_v24  ;;  %v631_v29 = vrot.slane %v610_v25, 4  ;;  %v942_v30 = vpop.f32.mrb[0].mxu1 }
 0x1d4   : > { %v639_v31 = vrot.slane %v638_v26, 2  ;;  %v644_v32 = vmax.f32 %v612_v23, %v643_v27  ;;  %v571_v33 = vadd.f32 %v942_v30, %v1226_v11  ;;  %v562_v34 = vpop.f32.mrb[1].mxu1 }
 0x1d5   : > { %v627_v35 = vrot.slane %v626_v28, 2  ;;  %v632_v36 = vmax.f32 %v610_v25, %v631_v29  ;;  %v563_v37 = vadd.f32 %v1226_v11, %v562_v34  ;;  %v943_v38 = vpop.f32.mrb[2].mxu1 }
 0x1d6   : > { %v640_v39 = vmax.f32 %v638_v26, %v639_v31  ;;  %v645_v40 = vrot.slane %v644_v32, 2  ;;  %v615_v41 = vmax.f32 %v571_v33, 0.0  ;;  %v574_v42 = vadd.f32 %v943_v38, %v1226_v11  ;;  %v565_v43 = vpop.f32.mrb[3].mxu1 }
 0x1d7   : > { %v628_v44 = vmax.f32 %v626_v28, %v627_v35  ;;  %v633_v45 = vrot.slane %v632_v36, 2  ;;  %v613_v46 = vmax.f32 %v563_v37, 0.0  ;;  %v566_v47 = vadd.f32 %v1226_v11, %v565_v43 }
 0x1d8   : > { %v641_v48 = vrot.slane %v640_v39, 1  ;;  %v646_v49 = vmax.f32 %v644_v32, %v645_v40  ;;  %v661_v50 = vrot.slane %v615_v41, 4  ;;  %v616_v51 = vmax.f32 %v574_v42, 0.0 }
 0x1d9   : > { %v629_v52 = vrot.slane %v628_v44, 1  ;;  %v634_v53 = vmax.f32 %v632_v36, %v633_v45  ;;  %v649_v54 = vrot.slane %v613_v46, 4  ;;  %v614_v55 = vmax.f32 %v566_v47, 0.0 }
 0x1da   : > { %v642_v56 = vmax.f32 %v640_v39, %v641_v48  ;;  %v647_v57 = vrot.slane %v646_v49, 1  ;;  %v662_v58 = vmax.f32 %v615_v41, %v661_v50  ;;  %v667_v59 = vrot.slane %v616_v51, 4 }
 0x1db   : > { %v630_v60 = vmax.f32 %v628_v44, %v629_v52  ;;  %v635_v61 = vrot.slane %v634_v53, 1  ;;  %v650_v62 = vmax.f32 %v613_v46, %v649_v54  ;;  %v655_v63 = vrot.slane %v614_v55, 4  ;;  %v946_v0 = vpop.f32.mrb[4].mxu1 }
 0x1dc   : > { %v648_v1 = vmax.f32 %v646_v49, %v647_v57  ;;  %v663_v2 = vrot.slane %v662_v58, 2  ;;  %v668_v3 = vmax.f32 %v616_v51, %v667_v59  ;;  %v587_v4 = vadd.f32 %v946_v0, %v1226_v11  ;;  %v578_v5 = vpop.f32.mrb[5].mxu1 }
 0x1dd   : > { %v636_v6 = vmax.f32 %v634_v53, %v635_v61  ;;  %v651_v7 = vrot.slane %v650_v62, 2  ;;  %v656_v8 = vmax.f32 %v614_v55, %v655_v63  ;;  %v579_v9 = vadd.f32 %v1226_v11, %v578_v5  ;;  %v947_v10 = vpop.f32.mrb[6].mxu1 }
 0x1de   : > { %v664_v12 = vmax.f32 %v662_v58, %v663_v2  ;;  %v669_v13 = vrot.slane %v668_v3, 2  ;;  %v619_v14 = vmax.f32 %v587_v4, 0.0  ;;  %v590_v15 = vadd.f32 %v947_v10, %v1226_v11  ;;  %v581_v16 = vpop.f32.mrb[7].mxu1 }
 0x1df   : > { %v738_v17 = vsel %vm737_vm2, %v636_v6, %v630_v60  ;;  %v652_v18 = vmax.f32 %v650_v62, %v651_v7  ;;  %v657_v19 = vrot.slane %v656_v8, 2  ;;  %v617_v20 = vmax.f32 %v579_v9, 0.0 }
 0x1e0   : > { %v740_v21 = vsel %vm739_vm3, %v642_v56, %v738_v17  ;;  %v665_v22 = vrot.slane %v664_v12, 1  ;;  %v670_v23 = vmax.f32 %v668_v3, %v669_v13  ;;  %v685_v24 = vrot.slane %v619_v14, 4 }
 0x1e1   : > { %v653_v25 = vrot.slane %v652_v18, 1  ;;  %v742_v26 = vsel %vm741_vm4, %v648_v1, %v740_v21  ;;  %v658_v27 = vmax.f32 %v656_v8, %v657_v19  ;;  %v673_v28 = vrot.slane %v617_v20, 4 }
 0x1e2   : > { %v686_v29 = vmax.f32 %v619_v14, %v685_v24  ;;  %v620_v30 = vmax.f32 %v590_v15, 0.0  ;;  %v582_v34 = vadd.f32 %v1226_v11, %v581_v16  ;;  %v666_v36 = vmax.f32 %v664_v12, %v665_v22 }
 0x1e3   : > { %v654_v31 = vmax.f32 %v652_v18, %v653_v25  ;;  %v659_v32 = vrot.slane %v658_v27, 1  ;;  %v674_v33 = vmax.f32 %v617_v20, %v673_v28  ;;  %v950_v35 = vpop.f32.mrb[8].mxu1  ;;  %v671_v37 = vrot.slane %v670_v23, 1 }
 0x1e4   : > { %v691_v38 = vrot.slane %v620_v30, 4  ;;  %v603_v39 = vadd.f32 %v950_v35, %v1226_v11  ;;  %v594_v40 = vpop.f32.mrb[9].mxu1  ;;  %v618_v44 = vmax.f32 %v582_v34, 0.0  ;;  %v687_v46 = vrot.slane %v686_v29, 2 }
 0x1e5   : > { %v744_v41 = vsel %vm743_vm5, %v654_v31, %v742_v26  ;;  %v660_v42 = vmax.f32 %v658_v27, %v659_v32  ;;  %v675_v43 = vrot.slane %v674_v33, 2  ;;  %v951_v45 = vpop.f32.mrb[10].mxu1  ;;  %v595_v49 = vadd.f32 %v1226_v11, %v594_v40 }
 0x1e6   : > { %v692_v47 = vmax.f32 %v620_v30, %v691_v38  ;;  %v623_v48 = vmax.f32 %v603_v39, 0.0  ;;  %v597_v50 = vpop.f32.mrb[11].mxu1  ;;  %v679_v52 = vrot.slane %v618_v44, 4  ;;  %v606_v53 = vadd.f32 %v951_v45, %v1226_v11 }
 0x1e7   : > { %v746_v51 = vsel %vm745_vm6, %v660_v42, %v744_v41  ;;  %v676_v55 = vmax.f32 %v674_v33, %v675_v43  ;;  %v621_v59 = vmax.f32 %v595_v49, 0.0  ;;  %v672_v61 = vmax.f32 %v670_v23, %v671_v37 }
 0x1e8   : > { %v748_v54 = vsel %vm747_vm7, %v666_v36, %v746_v51  ;;  %v693_v56 = vrot.slane %v692_v47, 2  ;;  %v709_v57 = vrot.slane %v623_v48, 4  ;;  %v680_v58 = vmax.f32 %v618_v44, %v679_v52 }
 0x1e9   : > { %v624_v60 = vmax.f32 %v606_v53, 0.0  ;;  %v688_v62 = vmax.f32 %v686_v29, %v687_v46  ;;  %v598_v0 = vadd.f32 %v1226_v11, %v597_v50  ;;  %v697_v3 = vrot.slane %v621_v59, 4 }
 0x1ea   : > { %v710_v63 = vmax.f32 %v623_v48, %v709_v57  ;;  %v694_v1 = vmax.f32 %v692_v47, %v693_v56  ;;  %v681_v2 = vrot.slane %v680_v58, 2  ;;  %v677_v5 = vrot.slane %v676_v55, 1 }
 0x1eb   : > { %v715_v4 = vrot.slane %v624_v60, 4  ;;  %v622_v6 = vmax.f32 %v598_v0, 0.0  ;;  %v750_v7 = vsel %vm749_vm8, %v672_v61, %v748_v54  ;;  %v698_v10 = vmax.f32 %v621_v59, %v697_v3 }
 0x1ec   : > { %v682_v8 = vmax.f32 %v680_v58, %v681_v2  ;;  %v711_v9 = vrot.slane %v710_v63, 2  ;;  %760 = vst [vmem:[%s1254_s23] sm:$0xff] %v750_v7  ;;  %v689_v13 = vrot.slane %v688_v62, 1  ;;  %v695_v15 = vrot.slane %v694_v1, 1 }
 0x1ed   : > { %v716_v12 = vmax.f32 %v624_v60, %v715_v4  ;;  %v703_v14 = vrot.slane %v622_v6, 4  ;;  %v699_v16 = vrot.slane %v698_v10, 2  ;;  %v678_v19 = vmax.f32 %v676_v55, %v677_v5 }
 0x1ee   : > { %v683_v11 = vrot.slane %v682_v8, 1  ;;  %v712_v21 = vmax.f32 %v710_v63, %v711_v9  ;;  %v690_v23 = vmax.f32 %v688_v62, %v689_v13  ;;  %v696_v26 = vmax.f32 %v694_v1, %v695_v15 }
 0x1ef   : > { %v717_v17 = vrot.slane %v716_v12, 2  ;;  %v704_v18 = vmax.f32 %v622_v6, %v703_v14  ;;  %v700_v22 = vmax.f32 %v698_v10, %v699_v16 }
 0x1f0   : > { %v684_v20 = vmax.f32 %v682_v8, %v683_v11  ;;  %v713_v31 = vrot.slane %v712_v21, 1 }
 0x1f1   : > { %v718_v24 = vmax.f32 %v716_v12, %v717_v17  ;;  %v705_v25 = vrot.slane %v704_v18, 2  ;;  %v701_v28 = vrot.slane %v700_v22, 1 }
 0x1f2   : > { %v751_v27 = vsel %vm737_vm2, %v684_v20, %v678_v19  ;;  %v714_v38 = vmax.f32 %v712_v21, %v713_v31 }
 0x1f3   : > { %v752_v29 = vsel %vm739_vm3, %v690_v23, %v751_v27  ;;  %v706_v30 = vmax.f32 %v704_v18, %v705_v25  ;;  %v702_v32 = vmax.f32 %v700_v22, %v701_v28  ;;  %v719_v34 = vrot.slane %v718_v24, 1 }
 0x1f4   : > { %v753_v33 = vsel %vm741_vm4, %v696_v26, %v752_v29 }
 0x1f5   : > { %v707_v35 = vrot.slane %v706_v30, 1  ;;  %v754_v36 = vsel %vm743_vm5, %v702_v32, %v753_v33  ;;  %v720_v39 = vmax.f32 %v718_v24, %v719_v34 }
 0x1f7   : > { %v708_v37 = vmax.f32 %v706_v30, %v707_v35 }
 0x1f9   : > { %v755_v40 = vsel %vm745_vm6, %v708_v37, %v754_v36 }
 0x1fa   : > { %v756_v41 = vsel %vm747_vm7, %v714_v38, %v755_v40 }
 0x1fb   : > { %v757_v42 = vsel %vm749_vm8, %v720_v39, %v756_v41 }
 0x1fc   : > { %761 = vst [vmem:[%s1254_s23 + $0x8] sm:$0xff] %v757_v42 }
 0x1fd   : > { %1039 = shalt.err (!%p1036_p3)
}
 0x1fe   : > { %s1040_s12 = scalar_lea.hbm %s1267_s7, 256  ;;  %s1044_s15 = scalar_lea.hbm %s1322_s5, 512 }
 0x1ff   : > { %p1041_p4 = scmp.ne.s32.totalorder %s1267_s7, %s1040_s12  ;;  %p1045_p9 = scmp.lt.u32.totalorder %s1267_s7, %s1322_s5 }
 0x200   : > { %p1046_p10 = scmp.lt.u32.totalorder %s1044_s15, %s1040_s12  ;;  %p1048_p12 = scmp.lt.u32.totalorder %s1040_s12, %s1267_s7 }
 0x201   : > { %p1042_p7 = pnand %p1041_p4, %p1161_p5 }
 0x202   : > { %p1047_p11 = por %p1046_p10, %p1045_p9 }
 0x203   : > { %p1043_p8 = pneg %p1042_p7 }
 0x204   : > { %p1049_p13 = por %p1048_p12, %p1047_p11 }
 0x206   : > { %p1050_p0 = pnand %p1049_p13, %p1043_p8 }
 0x208   : > { %1053 = shalt.err (!%p1050_p0)
}
 0x209   : > { %s1091_s23 = smov 128   ;;  %s1092_s25 = smov 8  }
 0x20a   : > { %969 = dma.vmem_to_hbm [thread:$0]  (%p1161_p5), %s1269_s26, 256, %s1267_s7, %s1276_s22, %s1091_s23, %s1091_s23, %s1092_s25  }
 0x20b PF: > { %p975_p1 = scmp.ge.s32.totalorder %s1088_s21, 2  ;;  %s791_s30 = sand.u32 1, %s1076_s18  }
 0x20c   : > { %s792_s6 = scalar_lea.sflag [#allocation3], %s791_s30 }
 0x20d   : > { %p972_p2 = pnand %p975_p1, %p1165_p6 }
 0x20f   : > { %1071 = dma.done.wait (!%p972_p2), %s792_s6, 256  }
 0x210   : > { %1073 = vsyncadd (!%p972_p2), %s792_s6, 4294967040  ;;  %p15_p3 = scmp.ge.s32.totalorder %s1148_s24, 4   ;;  %s1325_s18 = smov %s1080_s19 }
 0x211   : > { %s1326_s19 = smov %s1084_s20  ;;  %s1327_s20 = smov %s1159_s27 }
 0x212   : > { %s1328_s21 = smov %s1148_s24  ;;  %17 = sbr.rel (!%p15_p3) target bundleno = 3 (0x3), region = 75 }
 0x219   :  { %797 = vsyncpa [#allocation3], 1 }
 0x21a   :  { %799 = vsyncpa [#allocation3 + $0x1], 1 }

// kernel: tpu_custom_call.1
= control target key start
LH: loop header
LB: loop body
LE: loop exit
PB: predicated region body
PF: predicated region fallthrough
CT: control target
= control target key end

     0   :  { %10 = vsyncpa [#allocation3], 0  ;;  %s1317_s0 = inlined_call_operand.vmem [shape: bf16[256,8], index: 0, kind: input, shape index: {}]   ;;  %s1318_s1 = inlined_call_operand.vmem [shape: bf16[8,128], index: 1, kind: input, shape index: {}]   ;;  %s1319_s2 = inlined_call_operand.vmem [shape: f32[1,128], index: 2, kind: input, shape index: {}]   ;;  %s1320_s3 = inlined_call_operand.vmem [shape: bf16[128,128], index: 3, kind: input, shape index: {}]   ;;  %s1321_s4 = inlined_call_operand.vmem [shape: f32[1,128], index: 4, kind: input, shape index: {}]   ;;  %s1322_s5 = inlined_call_operand.hbm [shape: f32[32,128], index: 5, kind: output, shape index: {}]  }
   0x1   :  { %12 = vsyncpa [#allocation3 + $0x1], 0  ;;  %s1123_s18 = smov 0   ;;  %s1125_s19 = smov 0  }
   0x2   :  { %s1127_s20 = smov 0   ;;  %s1129_s21 = smov 0  }
   0x3 LB: > { %s1144_s22 = sadd.s32 4294967295, %s1088_s21   ;;  %s838_s23 = sadd.s32 4294967294, %s1088_s21   ;;  %s1088_s21 = sphi %s1129_s21, %s1328_s21   ;;  %s1084_s20 = sphi %s1127_s20, %s1327_s20   ;;  %s1080_s19 = sphi %s1125_s19, %s1326_s19   ;;  %s1076_s18 = sphi %s1123_s18, %s1325_s18  }
   0x4   : > { %s1148_s24 = sadd.s32 1, %s1088_s21   ;;  %s135_s25 = sadd.s32 1, %s1084_s20 }
   0x5   : > { %s132_s26 = ssub.s32 %s1088_s21, %s1148_s24  ;;  %p145_p0 = scmp.ne.s32.totalorder %s1084_s20, %s1080_s19 }
   0x6   : > { %p133_p1 = scmp.eq.s32.totalorder %s132_s26, 0  ;;  %p146_p2 = scmp.eq.s32.totalorder %s1144_s22, 1 }
   0x7   : > { %p151_p3 = scmp.ne.s32.totalorder %s1080_s19, %s1076_s18  ;;  %p152_p4 = scmp.eq.s32.totalorder %s838_s23, 1 }
   0x8   : > { %s1159_s27 = scalar_select %p133_p1, %s1084_s20, %s135_s25  }
   0x9   : > { %p1161_p5 = por %p146_p2, %p145_p0  ;;  %p1165_p6 = por %p152_p4, %p151_p3 }
   0xa   : > { %p841_p7 = scmp.ge.s32.totalorder %s1088_s21, 1  ;;  %p191_p8 = scmp.lt.s32.totalorder %s1088_s21, 3 }
   0xc   : > { %p192_p9 = pnand %p841_p7, %p191_p8 }
   0xd   : > { %v243_v0 = vld [vmem:[%s1318_s1] sm:$0xf] (!%p192_p9)  ;;  %vm316_vm0 = vcmask (!%p192_p9), 1043456   ;;  %s843_s7 = sshll.u32 (!%p192_p9), %s1144_s22, 4  ;;  %v1019_v3 = vld [vmem:[%s1320_s3 + $0x8] sm:$0xff] (!%p192_p9)   ;;  %vm291_vm1 = vcmask (!%p192_p9), 64512  }
   0xe   : > { %195 = sbr.rel (%p192_p9) target bundleno = 523 (0x20b), region = 40  ;;  %v1018_v1 = vld [vmem:[%s1320_s3] sm:$0xff] (!%p192_p9)   ;;  %968 = vmatprep.subr.msk.bf16.mxu0 (!%p192_p9), %vm316_vm0, %v243_v0  ;;  %v318_v2 = vsel (!%p192_p9), %vm316_vm0, %v243_v0, 0  ;;  %p220_p10 = scmp.lt.s32.totalorder (!%p192_p9), %s843_s7, 31  ;;  %v1020_v4 = vld [vmem:[%s1320_s3 + $0x10] sm:$0xff] (!%p192_p9)   ;;  %v1021_v8 = vld [vmem:[%s1320_s3 + $0x18] sm:$0xff] (!%p192_p9)  }
   0xf   : > { %903 = vmatpush3.bf16.msra.mxu0 (!%p192_p9), %v318_v2  ;;  %952 = vmatprep.subr.bf16.mxu1 (!%p192_p9), %v1018_v1  ;;  %v1022_v10 = vld [vmem:[%s1320_s3 + $0x20] sm:$0xff] (!%p192_p9)   ;;  %v1023_v12 = vld [vmem:[%s1320_s3 + $0x28] sm:$0xff] (!%p192_p9)   ;;  %v1024_v16 = vld [vmem:[%s1320_s3 + $0x30] sm:$0xff] (!%p192_p9)   ;;  %vm737_vm2 = vcmask (!%p192_p9), 1041409   ;;  %vm739_vm3 = vcmask (!%p192_p9), 1042434   ;;  %vm741_vm4 = vcmask (!%p192_p9), 1043459  }
  0x10   : > { %920 = vmatprep.subr.bf16.mxu0 (!%p192_p9), %v1018_v1  ;;  %960 = vmatpush3.bf16.msra.mxu1 (!%p192_p9), %v1018_v1  ;;  %v1025_v17 = vld [vmem:[%s1320_s3 + $0x38] sm:$0xff] (!%p192_p9)   ;;  %v845_v18 = vld [vmem:[%s1319_s2] ss:$0 sm:$0xff] (!%p192_p9)  ;;  %vm743_vm5 = vcmask (!%p192_p9), 1044484   ;;  %vm745_vm6 = vcmask (!%p192_p9), 1045509   ;;  %vm747_vm7 = vcmask (!%p192_p9), 1046534  }
  0x11   : > { %953 = vmatprep.subr.bf16.mxu1 (!%p192_p9), %v1019_v3  ;;  %s216_s16 = sand.u32 (!%p192_p9), 1, %s1080_s19   ;;  %vm749_vm8 = vcmask (!%p192_p9), 1047559   ;;  %s876_s25 = sshll.u32 (!%p192_p9), %s1144_s22, 8 }
  0x12   : > { %s842_s17 = sshll.u32 (!%p192_p9), %s216_s16, 4  ;;  %s1276_s22 = scalar_lea.sflag (!%p192_p9), [#allocation3], %s216_s16 }
  0x13   : > { %s1254_s23 = scalar_lea.vmem (!%p192_p9), [#allocation2], %s842_s17  ;;  %s1090_s9 = smov (!%p192_p9), [#allocation2]  }
  0x14   : > { %961 = vmatpush3.bf16.msra.mxu1 (!%p192_p9), %v1019_v3  ;;  %s776_s26 = sshll.u32 (!%p192_p9), %s1254_s23, 4  ;;  %s1030_s10 = sshll.u32 (!%p192_p9), %s1090_s9, 4  ;;  %s1269_s26 = int_to_ptr.vmem [resolvable:$true] %s776_s26  ;;  %s1031_s10 = int_to_ptr.vmem [resolvable:$false] %s1030_s10 }
  0x15   : > { %s1330_s7 = smov (!%p220_p10, %s843_s7), 31  ;;  %954 = vmatprep.subr.bf16.mxu1 %v1020_v4  ;;  %s1026_s8 = scalar_lea.vmem %s1269_s26, 256 }
  0x16   : > { %s844_s12 = sshll.u32 %s1330_s7, 2  ;;  %s1267_s7 = scalar_lea.hbm %s1322_s5, %s876_s25 }
  0x17   : > { %s1184_s15 = scalar_lea.vmem %s1317_s0, %s844_s12  ;;  %p1027_p11 = scmp.ne.s32.totalorder %s1269_s26, %s1026_s8 }
  0x18   : > { %v1010_v5 = vld [vmem:[%s1184_s15] sm:$0xff]   ;;  %v1011_v6 = vld [vmem:[%s1184_s15 + $0x8] sm:$0xff]   ;;  %v1012_v7 = vld [vmem:[%s1184_s15 + $0x10] sm:$0xff]   ;;  %962 = vmatpush3.bf16.msra.mxu1 %v1020_v4  ;;  %s1032_s11 = scalar_lea.vmem %s1031_s10, 512  ;;  %p1033_p0 = scmp.lt.s32.totalorder %s1269_s26, %s1031_s10 }
  0x19   : > { %904 = vmatprep.mubr.msk.bf16.mxu0 %vm291_vm1, %v1010_v5  ;;  %v1013_v9 = vld [vmem:[%s1184_s15 + $0x18] sm:$0xff]   ;;  %955 = vmatprep.subr.bf16.mxu1 %v1021_v8  ;;  %v1014_v11 = vld [vmem:[%s1184_s15 + $0x20] sm:$0xff]   ;;  %v1015_v13 = vld [vmem:[%s1184_s15 + $0x28] sm:$0xff]   ;;  %p1028_p12 = pnand %p1027_p11, %p1161_p5  ;;  %p1034_p1 = scmp.lt.s32.totalorder %s1032_s11, %s1026_s8 }
  0x1a   : > { %905 = vmatmul.mubr.msk.bf16.vlgmr.msra.gmra.mrb[0].mxu0 %vm291_vm1, %v1011_v6  ;;  %v1016_v14 = vld [vmem:[%s1184_s15 + $0x30] sm:$0xff]   ;;  %v1017_v15 = vld [vmem:[%s1184_s15 + $0x38] sm:$0xff]  }
  0x1b   : > { %908 = vmatprep.mubr.msk.bf16.mxu0 %vm291_vm1, %v1012_v7  ;;  %921 = vmatpush3.bf16.msra.mxu0 %v1018_v1  ;;  %p1029_p13 = pneg %p1028_p12  ;;  %p1035_p2 = por %p1034_p1, %p1033_p0 }
  0x1c   : > { %922 = vmatprep.subr.bf16.mxu0 %v1019_v3  ;;  %963 = vmatpush3.bf16.msra.mxu1 %v1021_v8 }
  0x1d   : > { %956 = vmatprep.subr.bf16.mxu1 %v1022_v10  ;;  %p1036_p3 = pnand %p1035_p2, %p1029_p13 }
  0x1f   : > { %923 = vmatpush3.bf16.msra.mxu0 %v1019_v3 }
  0x20   : > { %924 = vmatprep.subr.bf16.mxu0 %v1020_v4  ;;  %964 = vmatpush3.bf16.msra.mxu1 %v1022_v10 }
  0x21   : > { %957 = vmatprep.subr.bf16.mxu1 %v1023_v12 }
  0x22   : > { %909 = vmatmul.mubr.msk.bf16.gmra.mrb[4].mxu0 %vm291_vm1, %v1013_v9 }
  0x23   : > { %912 = vmatprep.mubr.msk.bf16.mxu0 %vm291_vm1, %v1014_v11  ;;  %925 = vmatpush3.bf16.msra.mxu0 %v1020_v4  ;;  %v1226_v11 = vld [vmem:[%s1321_s4] ss:$0 sm:$0xff] }
  0x24   : > { %926 = vmatprep.subr.bf16.mxu0 %v1021_v8  ;;  %965 = vmatpush3.bf16.msra.mxu1 %v1023_v12 }
  0x25   : > { %958 = vmatprep.subr.bf16.mxu1 %v1024_v16 }
  0x27   : > { %927 = vmatpush3.bf16.msra.mxu0 %v1021_v8 }
  0x28   : > { %928 = vmatprep.subr.bf16.mxu0 %v1022_v10  ;;  %966 = vmatpush3.bf16.msra.mxu1 %v1024_v16 }
  0x29   : > { %959 = vmatprep.subr.bf16.mxu1 %v1025_v17 }
  0x2a   : > { %913 = vmatmul.mubr.msk.bf16.gmra.mrb[8].mxu0 %vm291_vm1, %v1015_v13 }
  0x2b   : > { %916 = vmatprep.mubr.msk.bf16.mxu0 %vm291_vm1, %v1016_v14  ;;  %929 = vmatpush3.bf16.msra.mxu0 %v1022_v10 }
  0x2c   : > { %930 = vmatprep.subr.bf16.mxu0 %v1023_v12  ;;  %967 = vmatpush3.bf16.msra.mxu1 %v1025_v17 }
  0x2f   : > { %931 = vmatpush3.bf16.msra.mxu0 %v1023_v12 }
  0x30   : > { %932 = vmatprep.subr.bf16.mxu0 %v1024_v16 }
  0x32   : > { %917 = vmatmul.mubr.msk.bf16.gmra.mrb[12].mxu0 %vm291_vm1, %v1017_v15 }
  0x33   : > { %933 = vmatpush3.bf16.msra.mxu0 %v1024_v16 }
  0x34   : > { %934 = vmatprep.subr.bf16.mxu0 %v1025_v17 }
  0x37   : > { %935 = vmatpush3.bf16.msra.mxu0 %v1025_v17 }
  0xed   : > { %v906_v19 = vpop.f32.mrb[0].mxu0 }
  0xee   : > { %v363_v20 = vadd.f32 %v906_v19, %v845_v18  ;;  %v354_v21 = vpop.f32.mrb[1].mxu0 }
  0xef   : > { %v355_v22 = vadd.f32 %v845_v18, %v354_v21  ;;  %v907_v23 = vpop.f32.mrb[2].mxu0 }
  0xf0   : > { %v366_v24 = vadd.f32 %v907_v23, %v845_v18  ;;  %v357_v25 = vpop.f32.mrb[3].mxu0  ;;  %v419_v27 = vmax.f32 %v363_v20, 0.0 }
  0xf1   : > { %v358_v26 = vadd.f32 %v845_v18, %v357_v25  ;;  %v417_v29 = vmax.f32 %v355_v22, 0.0 }
  0xf2   : > { %v420_v28 = vmax.f32 %v366_v24, 0.0 }
  0xf3   : > { %v418_v30 = vmax.f32 %v358_v26, 0.0 }
  0xf4   : > { %v434_v31 = vpack.c.bf16 %v420_v28, %v419_v27 }
  0xf5   : > { %v433_v32 = vpack.c.bf16 %v418_v30, %v417_v29  ;;  %v910_v33 = vpop.f32.mrb[4].mxu0 }
  0xf6   : > { %v379_v34 = vadd.f32 %v910_v33, %v845_v18  ;;  %v370_v35 = vpop.f32.mrb[5].mxu0 }
  0xf7   : > { %v371_v36 = vadd.f32 %v845_v18, %v370_v35  ;;  %v911_v37 = vpop.f32.mrb[6].mxu0  ;;  %936 = vmatprep.mubr.bf16.mxu0 %v433_v32 }
  0xf8   : > { %v382_v38 = vadd.f32 %v911_v37, %v845_v18  ;;  %v373_v39 = vpop.f32.mrb[7].mxu0  ;;  %937 = vmatmul.mubr.bf16.vlgmr.msra.gmra.mrb[16].mxu0 %v434_v31  ;;  %v423_v41 = vmax.f32 %v379_v34, 0.0 }
  0xf9   : > { %v374_v40 = vadd.f32 %v845_v18, %v373_v39  ;;  %v421_v43 = vmax.f32 %v371_v36, 0.0 }
  0xfa   : > { %v424_v42 = vmax.f32 %v382_v38, 0.0 }
  0xfb   : > { %v422_v44 = vmax.f32 %v374_v40, 0.0 }
  0xfc   : > { %v436_v45 = vpack.c.bf16 %v424_v42, %v423_v41 }
  0xfd   : > { %v914_v46 = vpop.f32.mrb[8].mxu0  ;;  %v435_v47 = vpack.c.bf16 %v422_v44, %v421_v43 }
  0xfe   : > { %v395_v48 = vadd.f32 %v914_v46, %v845_v18  ;;  %v386_v49 = vpop.f32.mrb[9].mxu0 }
  0xff   : > { %v387_v50 = vadd.f32 %v845_v18, %v386_v49  ;;  %v915_v51 = vpop.f32.mrb[10].mxu0  ;;  %940 = vmatprep.mubr.bf16.mxu1 %v435_v47 }
 0x100   : > { %v398_v52 = vadd.f32 %v915_v51, %v845_v18  ;;  %v389_v53 = vpop.f32.mrb[11].mxu0  ;;  %941 = vmatmul.mubr.bf16.vlgmr.msra.gmra.mrb[0].mxu1 %v436_v45  ;;  %v427_v55 = vmax.f32 %v395_v48, 0.0 }
 0x101   : > { %v390_v54 = vadd.f32 %v845_v18, %v389_v53  ;;  %v425_v57 = vmax.f32 %v387_v50, 0.0 }
 0x102   : > { %v428_v56 = vmax.f32 %v398_v52, 0.0 }
 0x103   : > { %v426_v58 = vmax.f32 %v390_v54, 0.0 }
 0x104   : > { %v438_v59 = vpack.c.bf16 %v428_v56, %v427_v55 }
 0x105   : > { %v437_v60 = vpack.c.bf16 %v426_v58, %v425_v57  ;;  %v918_v61 = vpop.f32.mrb[12].mxu0 }
 0x106   : > { %v411_v62 = vadd.f32 %v918_v61, %v845_v18  ;;  %v402_v63 = vpop.f32.mrb[13].mxu0 }
 0x107   : > { %v403_v0 = vadd.f32 %v845_v18, %v402_v63  ;;  %v919_v1 = vpop.f32.mrb[14].mxu0  ;;  %944 = vmatprep.mubr.bf16.mxu1 %v437_v60 }
 0x108   : > { %v414_v2 = vadd.f32 %v919_v1, %v845_v18  ;;  %v405_v3 = vpop.f32.mrb[15].mxu0  ;;  %945 = vmatmul.mubr.bf16.gmra.mrb[4].mxu1 %v438_v59  ;;  %v431_v5 = vmax.f32 %v411_v62, 0.0 }
 0x109   : > { %v406_v4 = vadd.f32 %v845_v18, %v405_v3  ;;  %v429_v7 = vmax.f32 %v403_v0, 0.0 }
 0x10a   : > { %v432_v6 = vmax.f32 %v414_v2, 0.0 }
 0x10b   : > { %v430_v8 = vmax.f32 %v406_v4, 0.0 }
 0x10c   : > { %v440_v9 = vpack.c.bf16 %v432_v6, %v431_v5 }
 0x10d   : > { %v439_v10 = vpack.c.bf16 %v430_v8, %v429_v7 }
 0x10f   : > { %948 = vmatprep.mubr.bf16.mxu1 %v439_v10 }
 0x110   : > { %949 = vmatmul.mubr.bf16.gmra.mrb[8].mxu1 %v440_v9 }
 0x1cb   : > { %v938_v12 = vpop.f32.mrb[16].mxu0 }
 0x1cc   : > { %v555_v13 = vadd.f32 %v938_v12, %v1226_v11  ;;  %v546_v14 = vpop.f32.mrb[17].mxu0 }
 0x1cd   : > { %v547_v15 = vadd.f32 %v1226_v11, %v546_v14  ;;  %v939_v16 = vpop.f32.mrb[18].mxu0 }
 0x1ce   : > { %v611_v17 = vmax.f32 %v555_v13, 0.0  ;;  %v558_v18 = vadd.f32 %v939_v16, %v1226_v11  ;;  %v549_v19 = vpop.f32.mrb[19].mxu0 }
 0x1cf   : > { %v609_v20 = vmax.f32 %v547_v15, 0.0  ;;  %v550_v21 = vadd.f32 %v1226_v11, %v549_v19 }
 0x1d0   : > { %v637_v22 = vrot.slane %v611_v17, 4  ;;  %v612_v23 = vmax.f32 %v558_v18, 0.0 }
 0x1d1   : > { %v625_v24 = vrot.slane %v609_v20, 4  ;;  %v610_v25 = vmax.f32 %v550_v21, 0.0 }
 0x1d2   : > { %v638_v26 = vmax.f32 %v611_v17, %v637_v22  ;;  %v643_v27 = vrot.slane %v612_v23, 4 }
 0x1d3   : > { %v626_v28 = vmax.f32 %v609_v20, %v625_v24  ;;  %v631_v29 = vrot.slane %v610_v25, 4  ;;  %v942_v30 = vpop.f32.mrb[0].mxu1 }
 0x1d4   : > { %v639_v31 = vrot.slane %v638_v26, 2  ;;  %v644_v32 = vmax.f32 %v612_v23, %v643_v27  ;;  %v571_v33 = vadd.f32 %v942_v30, %v1226_v11  ;;  %v562_v34 = vpop.f32.mrb[1].mxu1 }
 0x1d5   : > { %v627_v35 = vrot.slane %v626_v28, 2  ;;  %v632_v36 = vmax.f32 %v610_v25, %v631_v29  ;;  %v563_v37 = vadd.f32 %v1226_v11, %v562_v34  ;;  %v943_v38 = vpop.f32.mrb[2].mxu1 }
 0x1d6   : > { %v640_v39 = vmax.f32 %v638_v26, %v639_v31  ;;  %v645_v40 = vrot.slane %v644_v32, 2  ;;  %v615_v41 = vmax.f32 %v571_v33, 0.0  ;;  %v574_v42 = vadd.f32 %v943_v38, %v1226_v11  ;;  %v565_v43 = vpop.f32.mrb[3].mxu1 }
 0x1d7   : > { %v628_v44 = vmax.f32 %v626_v28, %v627_v35  ;;  %v633_v45 = vrot.slane %v632_v36, 2  ;;  %v613_v46 = vmax.f32 %v563_v37, 0.0  ;;  %v566_v47 = vadd.f32 %v1226_v11, %v565_v43 }
 0x1d8   : > { %v641_v48 = vrot.slane %v640_v39, 1  ;;  %v646_v49 = vmax.f32 %v644_v32, %v645_v40  ;;  %v661_v50 = vrot.slane %v615_v41, 4  ;;  %v616_v51 = vmax.f32 %v574_v42, 0.0 }
 0x1d9   : > { %v629_v52 = vrot.slane %v628_v44, 1  ;;  %v634_v53 = vmax.f32 %v632_v36, %v633_v45  ;;  %v649_v54 = vrot.slane %v613_v46, 4  ;;  %v614_v55 = vmax.f32 %v566_v47, 0.0 }
 0x1da   : > { %v642_v56 = vmax.f32 %v640_v39, %v641_v48  ;;  %v647_v57 = vrot.slane %v646_v49, 1  ;;  %v662_v58 = vmax.f32 %v615_v41, %v661_v50  ;;  %v667_v59 = vrot.slane %v616_v51, 4 }
 0x1db   : > { %v630_v60 = vmax.f32 %v628_v44, %v629_v52  ;;  %v635_v61 = vrot.slane %v634_v53, 1  ;;  %v650_v62 = vmax.f32 %v613_v46, %v649_v54  ;;  %v655_v63 = vrot.slane %v614_v55, 4  ;;  %v946_v0 = vpop.f32.mrb[4].mxu1 }
 0x1dc   : > { %v648_v1 = vmax.f32 %v646_v49, %v647_v57  ;;  %v663_v2 = vrot.slane %v662_v58, 2  ;;  %v668_v3 = vmax.f32 %v616_v51, %v667_v59  ;;  %v587_v4 = vadd.f32 %v946_v0, %v1226_v11  ;;  %v578_v5 = vpop.f32.mrb[5].mxu1 }
 0x1dd   : > { %v636_v6 = vmax.f32 %v634_v53, %v635_v61  ;;  %v651_v7 = vrot.slane %v650_v62, 2  ;;  %v656_v8 = vmax.f32 %v614_v55, %v655_v63  ;;  %v579_v9 = vadd.f32 %v1226_v11, %v578_v5  ;;  %v947_v10 = vpop.f32.mrb[6].mxu1 }
 0x1de   : > { %v664_v12 = vmax.f32 %v662_v58, %v663_v2  ;;  %v669_v13 = vrot.slane %v668_v3, 2  ;;  %v619_v14 = vmax.f32 %v587_v4, 0.0  ;;  %v590_v15 = vadd.f32 %v947_v10, %v1226_v11  ;;  %v581_v16 = vpop.f32.mrb[7].mxu1 }
 0x1df   : > { %v738_v17 = vsel %vm737_vm2, %v636_v6, %v630_v60  ;;  %v652_v18 = vmax.f32 %v650_v62, %v651_v7  ;;  %v657_v19 = vrot.slane %v656_v8, 2  ;;  %v617_v20 = vmax.f32 %v579_v9, 0.0 }
 0x1e0   : > { %v740_v21 = vsel %vm739_vm3, %v642_v56, %v738_v17  ;;  %v665_v22 = vrot.slane %v664_v12, 1  ;;  %v670_v23 = vmax.f32 %v668_v3, %v669_v13  ;;  %v685_v24 = vrot.slane %v619_v14, 4 }
 0x1e1   : > { %v653_v25 = vrot.slane %v652_v18, 1  ;;  %v742_v26 = vsel %vm741_vm4, %v648_v1, %v740_v21  ;;  %v658_v27 = vmax.f32 %v656_v8, %v657_v19  ;;  %v673_v28 = vrot.slane %v617_v20, 4 }
 0x1e2   : > { %v686_v29 = vmax.f32 %v619_v14, %v685_v24  ;;  %v620_v30 = vmax.f32 %v590_v15, 0.0  ;;  %v582_v34 = vadd.f32 %v1226_v11, %v581_v16  ;;  %v666_v36 = vmax.f32 %v664_v12, %v665_v22 }
 0x1e3   : > { %v654_v31 = vmax.f32 %v652_v18, %v653_v25  ;;  %v659_v32 = vrot.slane %v658_v27, 1  ;;  %v674_v33 = vmax.f32 %v617_v20, %v673_v28  ;;  %v950_v35 = vpop.f32.mrb[8].mxu1  ;;  %v671_v37 = vrot.slane %v670_v23, 1 }
 0x1e4   : > { %v691_v38 = vrot.slane %v620_v30, 4  ;;  %v603_v39 = vadd.f32 %v950_v35, %v1226_v11  ;;  %v594_v40 = vpop.f32.mrb[9].mxu1  ;;  %v618_v44 = vmax.f32 %v582_v34, 0.0  ;;  %v687_v46 = vrot.slane %v686_v29, 2 }
 0x1e5   : > { %v744_v41 = vsel %vm743_vm5, %v654_v31, %v742_v26  ;;  %v660_v42 = vmax.f32 %v658_v27, %v659_v32  ;;  %v675_v43 = vrot.slane %v674_v33, 2  ;;  %v951_v45 = vpop.f32.mrb[10].mxu1  ;;  %v595_v49 = vadd.f32 %v1226_v11, %v594_v40 }
 0x1e6   : > { %v692_v47 = vmax.f32 %v620_v30, %v691_v38  ;;  %v623_v48 = vmax.f32 %v603_v39, 0.0  ;;  %v597_v50 = vpop.f32.mrb[11].mxu1  ;;  %v679_v52 = vrot.slane %v618_v44, 4  ;;  %v606_v53 = vadd.f32 %v951_v45, %v1226_v11 }
 0x1e7   : > { %v746_v51 = vsel %vm745_vm6, %v660_v42, %v744_v41  ;;  %v676_v55 = vmax.f32 %v674_v33, %v675_v43  ;;  %v621_v59 = vmax.f32 %v595_v49, 0.0  ;;  %v672_v61 = vmax.f32 %v670_v23, %v671_v37 }
 0x1e8   : > { %v748_v54 = vsel %vm747_vm7, %v666_v36, %v746_v51  ;;  %v693_v56 = vrot.slane %v692_v47, 2  ;;  %v709_v57 = vrot.slane %v623_v48, 4  ;;  %v680_v58 = vmax.f32 %v618_v44, %v679_v52 }
 0x1e9   : > { %v624_v60 = vmax.f32 %v606_v53, 0.0  ;;  %v688_v62 = vmax.f32 %v686_v29, %v687_v46  ;;  %v598_v0 = vadd.f32 %v1226_v11, %v597_v50  ;;  %v697_v3 = vrot.slane %v621_v59, 4 }
 0x1ea   : > { %v710_v63 = vmax.f32 %v623_v48, %v709_v57  ;;  %v694_v1 = vmax.f32 %v692_v47, %v693_v56  ;;  %v681_v2 = vrot.slane %v680_v58, 2  ;;  %v677_v5 = vrot.slane %v676_v55, 1 }
 0x1eb   : > { %v715_v4 = vrot.slane %v624_v60, 4  ;;  %v622_v6 = vmax.f32 %v598_v0, 0.0  ;;  %v750_v7 = vsel %vm749_vm8, %v672_v61, %v748_v54  ;;  %v698_v10 = vmax.f32 %v621_v59, %v697_v3 }
 0x1ec   : > { %v682_v8 = vmax.f32 %v680_v58, %v681_v2  ;;  %v711_v9 = vrot.slane %v710_v63, 2  ;;  %760 = vst [vmem:[%s1254_s23] sm:$0xff] %v750_v7  ;;  %v689_v13 = vrot.slane %v688_v62, 1  ;;  %v695_v15 = vrot.slane %v694_v1, 1 }
 0x1ed   : > { %v716_v12 = vmax.f32 %v624_v60, %v715_v4  ;;  %v703_v14 = vrot.slane %v622_v6, 4  ;;  %v699_v16 = vrot.slane %v698_v10, 2  ;;  %v678_v19 = vmax.f32 %v676_v55, %v677_v5 }
 0x1ee   : > { %v683_v11 = vrot.slane %v682_v8, 1  ;;  %v712_v21 = vmax.f32 %v710_v63, %v711_v9  ;;  %v690_v23 = vmax.f32 %v688_v62, %v689_v13  ;;  %v696_v26 = vmax.f32 %v694_v1, %v695_v15 }
 0x1ef   : > { %v717_v17 = vrot.slane %v716_v12, 2  ;;  %v704_v18 = vmax.f32 %v622_v6, %v703_v14  ;;  %v700_v22 = vmax.f32 %v698_v10, %v699_v16 }
 0x1f0   : > { %v684_v20 = vmax.f32 %v682_v8, %v683_v11  ;;  %v713_v31 = vrot.slane %v712_v21, 1 }
 0x1f1   : > { %v718_v24 = vmax.f32 %v716_v12, %v717_v17  ;;  %v705_v25 = vrot.slane %v704_v18, 2  ;;  %v701_v28 = vrot.slane %v700_v22, 1 }
 0x1f2   : > { %v751_v27 = vsel %vm737_vm2, %v684_v20, %v678_v19  ;;  %v714_v38 = vmax.f32 %v712_v21, %v713_v31 }
 0x1f3   : > { %v752_v29 = vsel %vm739_vm3, %v690_v23, %v751_v27  ;;  %v706_v30 = vmax.f32 %v704_v18, %v705_v25  ;;  %v702_v32 = vmax.f32 %v700_v22, %v701_v28  ;;  %v719_v34 = vrot.slane %v718_v24, 1 }
 0x1f4   : > { %v753_v33 = vsel %vm741_vm4, %v696_v26, %v752_v29 }
 0x1f5   : > { %v707_v35 = vrot.slane %v706_v30, 1  ;;  %v754_v36 = vsel %vm743_vm5, %v702_v32, %v753_v33  ;;  %v720_v39 = vmax.f32 %v718_v24, %v719_v34 }
 0x1f7   : > { %v708_v37 = vmax.f32 %v706_v30, %v707_v35 }
 0x1f9   : > { %v755_v40 = vsel %vm745_vm6, %v708_v37, %v754_v36 }
 0x1fa   : > { %v756_v41 = vsel %vm747_vm7, %v714_v38, %v755_v40 }
 0x1fb   : > { %v757_v42 = vsel %vm749_vm8, %v720_v39, %v756_v41 }
 0x1fc   : > { %761 = vst [vmem:[%s1254_s23 + $0x8] sm:$0xff] %v757_v42 }
 0x1fd   : > { %1039 = shalt.err (!%p1036_p3)
}
 0x1fe   : > { %s1040_s12 = scalar_lea.hbm %s1267_s7, 256  ;;  %s1044_s15 = scalar_lea.hbm %s1322_s5, 512 }
 0x1ff   : > { %p1041_p4 = scmp.ne.s32.totalorder %s1267_s7, %s1040_s12  ;;  %p1045_p9 = scmp.lt.u32.totalorder %s1267_s7, %s1322_s5 }
 0x200   : > { %p1046_p10 = scmp.lt.u32.totalorder %s1044_s15, %s1040_s12  ;;  %p1048_p12 = scmp.lt.u32.totalorder %s1040_s12, %s1267_s7 }
 0x201   : > { %p1042_p7 = pnand %p1041_p4, %p1161_p5 }
 0x202   : > { %p1047_p11 = por %p1046_p10, %p1045_p9 }
 0x203   : > { %p1043_p8 = pneg %p1042_p7 }
 0x204   : > { %p1049_p13 = por %p1048_p12, %p1047_p11 }
 0x206   : > { %p1050_p0 = pnand %p1049_p13, %p1043_p8 }
 0x208   : > { %1053 = shalt.err (!%p1050_p0)
}
 0x209   : > { %s1091_s23 = smov 128   ;;  %s1092_s25 = smov 8  }
 0x20a   : > { %969 = dma.vmem_to_hbm [thread:$0]  (%p1161_p5), %s1269_s26, 256, %s1267_s7, %s1276_s22, %s1091_s23, %s1091_s23, %s1092_s25  }
 0x20b PF: > { %p975_p1 = scmp.ge.s32.totalorder %s1088_s21, 2  ;;  %s791_s30 = sand.u32 1, %s1076_s18  }
 0x20c   : > { %s792_s6 = scalar_lea.sflag [#allocation3], %s791_s30 }
 0x20d   : > { %p972_p2 = pnand %p975_p1, %p1165_p6 }
 0x20f   : > { %1071 = dma.done.wait (!%p972_p2), %s792_s6, 256  }
 0x210   : > { %1073 = vsyncadd (!%p972_p2), %s792_s6, 4294967040  ;;  %p15_p3 = scmp.ge.s32.totalorder %s1148_s24, 4   ;;  %s1325_s18 = smov %s1080_s19 }
 0x211   : > { %s1326_s19 = smov %s1084_s20  ;;  %s1327_s20 = smov %s1159_s27 }
 0x212   : > { %s1328_s21 = smov %s1148_s24  ;;  %17 = sbr.rel (!%p15_p3) target bundleno = 3 (0x3), region = 75 }
 0x219   :  { %797 = vsyncpa [#allocation3], 1 }
 0x21a   :  { %799 = vsyncpa [#allocation3 + $0x1], 1 }

</bundles_post_ra>
